<compile_context>
chip_gen: v6e
topology: v6e:2x2x1
jax: 0.10.0
libtpu: 0.0.40
codegen_flags: <defaults>
</compile_context>

<pallas_src>
import jax
import jax.numpy as jnp
from jax.experimental import pallas as pl
from jax.experimental.pallas import tpu as pltpu


# ----------------------------- kernels --------------------------------------


def _matvec_sigmoid_f32_kernel(b_ref, w_row_ref, x_ref, o_ref):
    # Exact f32 path (correctness/reference mode).
    # x_ref:     [tile_b, D] f32 (VMEM batch tile, double-buffered)
    # w_row_ref: [1, D]      f32 (VMEM, resident across the whole grid)
    # b_ref:     [1, 1]      f32 (SMEM scalar)
    # o_ref:     [tile_b, 1] f32
    prod = x_ref[...] * w_row_ref[...]             # VPU mul, broadcast over rows
    y = jnp.sum(prod, axis=-1, keepdims=True)      # XLU lane reduce -> [tile_b, 1]
    y = y + b_ref[0, 0]                            # scalar bias from SMEM
    o_ref[...] = 1.0 / (1.0 + jnp.exp(-y))         # EUP exp + exact divide


def _matvec_sigmoid_bf16_kernel(b_ref, w_mxu_ref, x_ref, o_ref):
    # bf16-streamed path (performance mode).
    # x_ref:     [tile_b, D] bf16
    # w_mxu_ref: [8, D]      bf16 (row 0 is w_eff; 8 identical rows keep the MXU
    #                              operand at a full sublane granule)
    # b_ref:     [1, 1]      f32  (SMEM scalar)
    # o_ref:     [1, 1, tile_b] f32  (lane-dense output row)
    y = jax.lax.dot_general(
        w_mxu_ref[...], x_ref[...],
        dimension_numbers=(((1,), (1,)), ((), ())),   # contract on D (q @ k.T style)
        preferred_element_type=jnp.float32)           # [8, tile_b], f32 accumulate
    y = y[0:1, :] + b_ref[0, 0]                       # row 0 is the real result
    sig = pl.reciprocal(1.0 + jnp.exp(-y), approx=True)   # EUP exp + EUP reciprocal
    o_ref[...] = sig.reshape(o_ref.shape)             # full-width lane-dense store


# --------------------------- tiling helpers ----------------------------------

_X_TILE_BYTES = 8 * 1024 * 1024  # budget per x buffer; Pallas double-buffers it


def _choose_tile_b(batch, d, itemsize):
    """Pick (tile_b, num_tiles) for the batch grid, VMEM- and megacore-aware."""
    rows = _X_TILE_BYTES // max(1, d * itemsize)
    rows = int(max(8, min(2048, rows)))
    # v7x has 2 TensorCores: keep >= 2 steps on the "parallel" batch axis
    # whenever there is enough work to split (no effect on v5e/v6e's single TC).
    if batch >= 256:
        rows = min(rows, -(-batch // 2))
    if rows >= batch:
        return batch, 1                       # one full-extent block (legal for any B)
    # Multi-tile: round the sublane dim up (128 keeps bf16 packing + lane-dense
    # stores happy; 16 covers the bf16 sublane pack for very large D).
    rows = -(-rows // 128) * 128 if rows >= 128 else -(-rows // 16) * 16
    return rows, -(-batch // rows)


def _vmem_limit_bytes(tile_b, d, itemsize):
    # x is double-buffered by the pipeline; w row / bias / out tiles are small.
    # Cap well under v7x's 64 MiB per-TensorCore VMEM (v5e/v6e have 128 MiB).
    need = 2 * tile_b * d * itemsize + (4 << 20)
    return int(min(48 << 20, max(16 << 20, need)))


# ------------------------------ wrapper --------------------------------------


def fuse_params(w1, b1, w2, b2):
    """One-time algebraic fusion of fc1/fc2 (exact up to f32 reassociation)."""
    hi = jax.lax.Precision.HIGHEST
    w_eff = jnp.dot(w1, w2, precision=hi)                       # [D, 1]
    b_eff = (jnp.dot(b1, w2, precision=hi) + b2).astype(jnp.float32)   # [1, 1]
    w_row = w_eff.T.astype(jnp.float32)                         # [1, D] lane-dense row
    w_mxu = jnp.broadcast_to(w_row, (8, w_row.shape[1])).astype(jnp.bfloat16)
    return {"w_row": w_row, "w_mxu": w_mxu, "b_eff": b_eff}


def simple_classifier_forward(x, fused):
    """x: [B, D] (float32 or bfloat16) -> sigmoid(x @ W_eff + b_eff): [B, 1] f32."""
    B, D = x.shape

    if x.dtype == jnp.bfloat16:
        # bf16 streaming + MXU + lane-dense output.
        tile_b, num_tiles = _choose_tile_b(B, D, 2)
        out = pl.pallas_call(
            _matvec_sigmoid_bf16_kernel,
            out_shape=jax.ShapeDtypeStruct((num_tiles, 1, tile_b), jnp.float32),
            grid=(num_tiles,),
            in_specs=[
                pl.BlockSpec(memory_space=pltpu.SMEM),          # b_eff scalar
                pl.BlockSpec((8, D), lambda i: (0, 0)),         # w rows, VMEM-resident
                pl.BlockSpec((tile_b, D), lambda i: (i, 0)),    # x batch tile
            ],
            out_specs=pl.BlockSpec((1, 1, tile_b), lambda i: (i, 0, 0)),
            compiler_params=pltpu.CompilerParams(
                dimension_semantics=("parallel",),
                vmem_limit_bytes=_vmem_limit_bytes(tile_b, D, 2)),
        )(fused["b_eff"], fused["w_mxu"], x)
        return out.reshape(-1)[:B].reshape(B, 1)

    # Exact f32 path.
    x = x.astype(jnp.float32)
    tile_b, num_tiles = _choose_tile_b(B, D, 4)
    out = pl.pallas_call(
        _matvec_sigmoid_f32_kernel,
        out_shape=jax.ShapeDtypeStruct((num_tiles * tile_b, 1), jnp.float32),
        grid=(num_tiles,),
        in_specs=[
            pl.BlockSpec(memory_space=pltpu.SMEM),              # b_eff scalar
            pl.BlockSpec((1, D), lambda i: (0, 0)),             # w row, VMEM-resident
            pl.BlockSpec((tile_b, D), lambda i: (i, 0)),        # x batch tile
        ],
        out_specs=pl.BlockSpec((tile_b, 1), lambda i: (i, 0)),
        compiler_params=pltpu.CompilerParams(
            dimension_semantics=("parallel",),
            vmem_limit_bytes=_vmem_limit_bytes(tile_b, D, 4)),
    )(fused["b_eff"], fused["w_row"], x)
    return out[:B]


def make_simple_classifier(w1, b1, w2, b2):
    """Hoists the fc1/fc2 fusion out of the per-call path; returns a jitted forward."""
    fused = fuse_params(w1, b1, w2, b2)

    @jax.jit
    def forward(x):
        return simple_classifier_forward(x, fused)

    return forward


# --------------------------- test harness ------------------------------------


def init_params(key, input_dim, hidden_dim):
    """Deterministic init mimicking nn.Linear's U(-1/sqrt(fan_in), 1/sqrt(fan_in)).

    Weights are stored transposed vs. PyTorch (w1: [D, H], w2: [H, 1]) so that
    x @ w + b matches nn.Linear's x @ W.T + b exactly.
    """
    k1, k2, k3, k4 = jax.random.split(key, 4)
    lim1 = 1.0 / jnp.sqrt(input_dim)
    lim2 = 1.0 / jnp.sqrt(hidden_dim)
    w1 = jax.random.uniform(k1, (input_dim, hidden_dim), jnp.float32, -lim1, lim1)
    b1 = jax.random.uniform(k2, (1, hidden_dim), jnp.float32, -lim1, lim1)
    w2 = jax.random.uniform(k3, (hidden_dim, 1), jnp.float32, -lim2, lim2)
    b2 = jax.random.uniform(k4, (1, 1), jnp.float32, -lim2, lim2)
    return w1, b1, w2, b2


def _reference(x, w1, b1, w2, b2):
    return jax.nn.sigmoid((x @ w1 + b1) @ w2 + b2)


if __name__ == "__main__":
    key = jax.random.PRNGKey(0)
    kx, kp, kx2 = jax.random.split(key, 3)

    # Small shapes consistent with the module.
    batch, input_dim, hidden_dim = 8, 16, 32
    x = jax.random.normal(kx, (batch, input_dim), jnp.float32)
    w1, b1, w2, b2 = init_params(kp, input_dim, hidden_dim)

    forward = make_simple_classifier(w1, b1, w2, b2)

    # Exact f32 path, single full-extent tile.
    out = jax.block_until_ready(forward(x))
    ref = _reference(x, w1, b1, w2, b2)
    assert out.shape == (batch, 1)
    assert jnp.allclose(out, ref, atol=1e-5, rtol=1e-5), float(jnp.max(jnp.abs(out - ref)))

    # Exact f32 path, multi-tile grid with a ragged last tile (no jnp.pad copy).
    big_b = 1050
    xb = jax.random.normal(kx2, (big_b, input_dim), jnp.float32)
    out_b = jax.block_until_ready(forward(xb))
    ref_b = _reference(xb, w1, b1, w2, b2)
    assert out_b.shape == (big_b, 1)
    assert jnp.allclose(out_b, ref_b, atol=1e-5, rtol=1e-5), float(jnp.max(jnp.abs(out_b - ref_b)))

    # bf16-streamed path (MXU + lane-dense output).  The cast here stands in
    # for an upstream producer that already emits bf16 activations; tolerance
    # is loosened accordingly (bf16 input rounding, f32 accumulation).
    out_h = jax.block_until_ready(forward(xb.astype(jnp.bfloat16)))
    assert out_h.shape == (big_b, 1)
    assert jnp.allclose(out_h, ref_b, atol=2e-2, rtol=2e-2), float(jnp.max(jnp.abs(out_h - ref_b)))

    print("KERNEL_OK")
</pallas_src>

<mosaic_0001>
module attributes {stable_mosaic.version = 11 : i64} {
  func.func @_matvec_sigmoid_f32_kernel(%arg0: i32, %arg1: memref<1x1xf32, #tpu.memory_space<smem>>, %arg2: memref<1x16xf32, #tpu.memory_space<vmem>>, %arg3: memref<8x16xf32, #tpu.memory_space<vmem>>, %arg4: memref<8x1xf32, #tpu.memory_space<vmem>>) attributes {dimension_semantics = [#tpu.dimension_semantics<parallel>], iteration_bounds = array<i64: 1>, scalar_prefetch = 0 : i64, scratch_operands = 0 : i64, tpu.core_type = #tpu.core_type<tc>, window_params = [{transform_indices = @transform_0, window_bounds = array<i64: 1, 1>}, {pipeline_mode = #tpu.pipeline_mode<synchronous>, transform_indices = @transform_1, window_bounds = array<i64: 1, 16>}, {transform_indices = @transform_2, window_bounds = array<i64: 8, 16>}, {transform_indices = @transform_3, window_bounds = array<i64: 8, 1>}]} {
    %c0 = arith.constant 0 : index
    %c0_0 = arith.constant 0 : index
    %0 = vector.load %arg3[%c0, %c0_0] : memref<8x16xf32, #tpu.memory_space<vmem>>, vector<8x16xf32>
    %c0_1 = arith.constant 0 : index
    %c0_2 = arith.constant 0 : index
    %1 = vector.load %arg2[%c0_1, %c0_2] : memref<1x16xf32, #tpu.memory_space<vmem>>, vector<1x16xf32>
    %2 = vector.broadcast %1 : vector<1x16xf32> to vector<8x16xf32>
    %3 = arith.mulf %0, %2 : vector<8x16xf32>
    %cst = arith.constant dense<0.000000e+00> : vector<8xf32>
    %4 = vector.multi_reduction <add>, %3, %cst [1] : vector<8x16xf32> to vector<8xf32>
    %5 = vector.shape_cast %4 : vector<8xf32> to vector<8x1xf32>
    %c0_3 = arith.constant 0 : index
    %c0_4 = arith.constant 0 : index
    %6 = memref.load %arg1[%c0_3, %c0_4] : memref<1x1xf32, #tpu.memory_space<smem>>
    %7 = vector.broadcast %6 : f32 to vector<8x1xf32>
    %8 = arith.addf %5, %7 : vector<8x1xf32>
    %cst_5 = arith.constant 0.000000e+00 : f32
    %9 = vector.broadcast %cst_5 : f32 to vector<8x1xf32>
    %10 = arith.subf %9, %8 : vector<8x1xf32>
    %11 = math.exp %10 : vector<8x1xf32>
    %cst_6 = arith.constant 1.000000e+00 : f32
    %12 = vector.broadcast %cst_6 : f32 to vector<8x1xf32>
    %13 = arith.addf %12, %11 : vector<8x1xf32>
    %cst_7 = arith.constant 1.000000e+00 : f32
    %14 = vector.broadcast %cst_7 : f32 to vector<8x1xf32>
    %15 = arith.divf %14, %13 : vector<8x1xf32>
    %c0_8 = arith.constant 0 : index
    %c0_9 = arith.constant 0 : index
    %16 = vector.load %arg4[%c0_8, %c0_9] : memref<8x1xf32, #tpu.memory_space<vmem>>, vector<8x1xf32>
    tpu.vector_store %arg4[%c0_8, %c0_9], %15 {strides = array<i32>} : memref<8x1xf32, #tpu.memory_space<vmem>>, vector<8x1xf32>,
    return
  }
  func.func @transform_0(%arg0: i32) -> (i32, i32) {
    %c0_i32 = arith.constant 0 : i32
    %c0_i32_0 = arith.constant 0 : i32
    %c0_i32_1 = arith.constant 0 : i32
    return %c0_i32, %c0_i32_0 : i32, i32
  }
  func.func @transform_1(%arg0: i32) -> (i32, i32) {
    %c0_i32 = arith.constant 0 : i32
    %c0_i32_0 = arith.constant 0 : i32
    %c0_i32_1 = arith.constant 0 : i32
    return %c0_i32, %c0_i32_0 : i32, i32
  }
  func.func @transform_2(%arg0: i32) -> (i32, i32) {
    %c0_i32 = arith.constant 0 : i32
    %c0_i32_0 = arith.constant 0 : i32
    return %arg0, %c0_i32 : i32, i32
  }
  func.func @transform_3(%arg0: i32) -> (i32, i32) {
    %c0_i32 = arith.constant 0 : i32
    %c0_i32_0 = arith.constant 0 : i32
    return %arg0, %c0_i32 : i32, i32
  }
}

</mosaic_0001>

<bundles_post_ra>
// kernel: forward.1
= control target key start
LH: loop header
LB: loop body
LE: loop exit
PB: predicated region body
PF: predicated region fallthrough
CT: control target
= control target key end

     0   :  { %9 = vsyncpa [#allocation4], 0  ;;  %s84_s12 = smov [#allocation3]   ;;  %s117_s0 = inlined_call_operand.<no memory space> [shape: f32[1,1], index: 0, kind: input, shape index: {}]   ;;  %s118_s1 = inlined_call_operand.vmem [shape: f32[1,16], index: 1, kind: input, shape index: {}]   ;;  %s119_s2 = inlined_call_operand.hbm [shape: f32[8,16], index: 2, kind: input, shape index: {}]   ;;  %s120_s3 = inlined_call_operand.vmem [shape: f32[8,1], index: 3, kind: output, shape index: {}]  }
   0x1   :  { %s20_s13 = sshll.u32 %s84_s12, 4  ;;  %s21_s13 = int_to_ptr.vmem [resolvable:$true] %s20_s13 }
   0x2   :  { %s70_s14 = scalar_lea.vmem %s21_s13, 128  ;;  %p75_p1 = scmp.lt.s32.totalorder %s21_s13, %s21_s13 }
   0x3   :  { %p71_p0 = scmp.ne.s32.totalorder %s21_s13, %s70_s14  ;;  %p76_p2 = scmp.lt.s32.totalorder %s70_s14, %s70_s14 }
   0x5   :  { %p77_p3 = por %p76_p2, %p75_p1 }
   0x7   :  { %p78_p4 = pnand %p77_p3, %p71_p0 }
   0x9   :  { %81 = shalt.err (!%p78_p4)
}
   0xa   :  { %23 = dma.hbm_to_vmem [thread:$0]  %s119_s2, 128, %s21_s13, [#allocation4]  }
   0xb   :  { %82 = dma.done.wait [#allocation4], 128  }
   0xc   :  { %83 = vsyncadd [#allocation4], 4294967168  ;;  %v27_v0 = vld [vmem:[#allocation3] sm:$0xff]  ;;  %vm36_vm0 = vcmask 130048   ;;  %v41_v4 = vstv %s117_s0  ;;  %vm49_vm1 = vcmask 7168  }
   0xd   :  { %v56_v1 = vld [vmem:[%s118_s1] ss:$0 sm:$0xff] }
   0xe   :  { %v35_v2 = vmul.f32 %v56_v1, %v27_v0 }
  0x10   :  { %v37_v3 = vsel %vm36_vm0, %v35_v2, 0.0 }
  0x11   :  { %38 = vadd.xlane.f32.xlu0 %v37_v3 }
  0x9a   :  { %v39_v5 = vpop.xlane.xlu0 %38 }
  0x9b   :  { %v42_v6 = vadd.f32 %v41_v4, %v39_v5 }
  0x9d   :  { %v43_v7 = vsub.f32 0.0, %v42_v6 }
  0x9f   :  { %v44_v8 = vmul.f32 1.442695, %v43_v7 }
  0xa1   :  { %58 = vpow2.f32 %v44_v8 }
  0xae   :  { %v59_v9 = vpop.eup %58 }
  0xaf   :  { %v46_v10 = vadd.f32 1.0, %v59_v9 }
  0xb1   :  { %60 = vrcp.f32 %v46_v10 }
  0xbe   :  { %v61_v11 = vpop.eup %60 }
  0xbf   :  { %50 = vst.msk [vmem:[%s120_s3] sm:$0xff] %vm49_vm1, %v61_v11 }
  0xc0   :  { %55 = vsyncpa [#allocation4], 1 }

</bundles_post_ra>
